<compile_context>
chip_gen: v6e
topology: v6e:2x2x1
jax: 0.10.0
libtpu: 0.0.40
codegen_flags: <defaults>
</compile_context>

<pallas_src>
import functools

import jax
import jax.numpy as jnp
from jax import lax
from jax.experimental import pallas as pl
from jax.experimental.pallas import tpu as pltpu

NEG_SLOPE = 0.01      # F.leaky_relu default negative_slope
# Large FINITE value: exp(NEG_INF - m) underflows to exactly 0 in f32, and
# (finite - finite) never produces NaN (unlike -inf - -inf).
NEG_INF = -1e30
EXT = 128             # lane pad for the folded e_l columns of W (keeps lane-dense)
HPAD = 8              # sublane pad for the per-head a_r rows / e_r^T rows


# ---------------------------------------------------------------------------
# Kernel 1: tiled heads-major projection + attention-score precompute
# ---------------------------------------------------------------------------
def _proj_kernel(z_ref, w_ref, b_ref, war_ref, bar_ref, zw_ref, el_ref, ert_ref):
    """
    z_ref   : [TM, F]        bf16  node features (query-row tile)
    w_ref   : [F, HD+EXT]    bf16  heads-major W^T; cols [HD, HD+H) = W_h^T a_l_h
    b_ref   : [1, HD+EXT]    f32   heads-major bias; same extra cols = b_h . a_l_h
    war_ref : [HPAD, F]      bf16  row h (< H) = W_h^T a_r_h
    bar_ref : [HPAD, 1]      f32   row h = b_h . a_r_h
    zw_ref  : [TM, HD]       bf16  projected features, heads-major (lane-dense)
    el_ref  : [TM, EXT]      f32   col h = e_l (query-side score)
    ert_ref : [HPAD, TM]     f32   row h = e_r (key-side score), pre-transposed
    """
    hd = zw_ref.shape[1]
    z = z_ref[...]
    # One MXU pass: projection + folded e_l columns, f32 accumulation.
    acc = jnp.dot(z, w_ref[...], preferred_element_type=jnp.float32) + b_ref[...]
    zw_ref[...] = acc[:, :hd].astype(jnp.bfloat16)
    el_ref[...] = acc[:, hd:]
    # e_r for all heads via one narrow matmul, already in transposed layout.
    ert_ref[...] = lax.dot_general(
        war_ref[...], z, (((1,), (1,)), ((), ())),
        preferred_element_type=jnp.float32) + bar_ref[...]


# ---------------------------------------------------------------------------
# Kernel 2: row-tiled masked softmax + bspmm (all heads)
# ---------------------------------------------------------------------------
def _attn_kernel(el_ref, ert_ref, zw_ref, adj_ref, o_ref, *, num_heads, head_dim):
    """
    el_ref  : [TM, EXT]   f32   query-side scores for this row tile
    ert_ref : [HPAD, N]   f32   key-side scores (whole array, resident)
    zw_ref  : [N, HD]     bf16  projected key/value features (whole array)
    adj_ref : [TM, N]     int8  {0,1} stored-nonzero mask of A_hat rows
    o_ref   : [TM, HD]    f32   heads-major output, lane-dense 128-wide stores
    """
    H, D = num_heads, head_dim

    # Additive mask bias, computed ONCE per tile (not per head).  Masked
    # entries become ~-1e30; exp(logits - m) then underflows to exactly 0.
    # INVARIANT: every row has >= 1 stored non-zero (self-loops in A_hat),
    # so the softmax denominator is always >= 1.
    neg_bias = jnp.where(adj_ref[...] != 0, 0.0, NEG_INF)          # [TM, N] f32

    el_all = el_ref[...]                                           # [TM, EXT]
    ert_all = ert_ref[...]                                         # [HPAD, N]

    # TODO(synk): for very large N, put heads on a grid axis / fori_loop and
    # tile keys with an online softmax to cap live [TM, N] temporaries.
    for h in range(H):                                             # static (H=4)
        e = el_all[:, h:h + 1] + ert_all[h:h + 1, :]               # [TM, N]
        a = jnp.where(e >= 0.0, e, NEG_SLOPE * e)                  # leaky_relu
        logits = a + neg_bias
        m = jnp.max(logits, axis=1, keepdims=True)
        p = jnp.exp(logits - m)              # masked entries -> exact 0 (underflow)
        denom = jnp.sum(p, axis=1, keepdims=True)                  # >= 1
        inv = pl.reciprocal(denom, approx=True)                    # EUP, ~free

        # bspmm with bf16 operands, f32 accumulation; normalize after matmul.
        out_h = jnp.dot(p.astype(jnp.bfloat16), zw_ref[:, h * D:(h + 1) * D],
                        preferred_element_type=jnp.float32) * inv
        o_ref[:, h * D:(h + 1) * D] = out_h                        # lane-dense store


# ---------------------------------------------------------------------------
# Wrapper: one-time weight re-layout / folding + two tiled pallas_calls
# ---------------------------------------------------------------------------
def gatconv_forward(adj_mask, Z, W_t, b, a_l, a_r, out_size, num_heads, *, tm=None):
    """adj_mask: [N,N] int8 {0,1} (must include self-loops); Z: [N,F] f32;
    W_t: [F, D*H] (torch col = d*H + h); b: [1, D*H]; a_l, a_r: [1, D, H].
    Returns torch-layout [N, out_size, num_heads]."""
    N, F = Z.shape
    D, H = out_size, num_heads
    HD = D * H
    assert N % 128 == 0 and D % 128 == 0 and F % 128 == 0

    if tm is None:
        # 256 fills the v6e/v7x 256x256 MXU; 128 matches v5e (and small N).
        tm = 256 if N % 256 == 0 else 128
    assert N % tm == 0
    ntiles = N // tm

    # --- heads-major re-layout (torch col d*H+h  ->  h*D+d) ---
    W_hm = jnp.transpose(W_t.reshape(F, D, H), (0, 2, 1)).reshape(F, HD)
    b_hm = jnp.transpose(b.reshape(1, D, H), (0, 2, 1)).reshape(1, HD)
    a_l_hd = jnp.transpose(a_l[0], (1, 0))                          # [H, D]
    a_r_hd = jnp.transpose(a_r[0], (1, 0))                          # [H, D]
    W_hm3 = W_hm.reshape(F, H, D)
    b_hd = b_hm.reshape(H, D)

    # --- fold e_l into the projection matmul as extra lane-padded columns ---
    wa_l = jnp.einsum("fhd,hd->fh", W_hm3, a_l_hd)                  # [F, H]
    ba_l = jnp.sum(b_hd * a_l_hd, axis=1)[None, :]                  # [1, H]
    W_full = jnp.concatenate(
        [W_hm, jnp.pad(wa_l, ((0, 0), (0, EXT - H)))], axis=1
    ).astype(jnp.bfloat16)                                          # [F, HD+EXT]
    b_full = jnp.concatenate(
        [b_hm, jnp.pad(ba_l, ((0, 0), (0, EXT - H)))], axis=1)      # [1, HD+EXT]

    # --- e_r computed per tile as rows via one [HPAD, F] x [F, TM] matmul ---
    wa_r = jnp.einsum("fhd,hd->hf", W_hm3, a_r_hd)                  # [H, F]
    ba_r = jnp.sum(b_hd * a_r_hd, axis=1)[:, None]                  # [H, 1]
    war = jnp.pad(wa_r, ((0, HPAD - H), (0, 0))).astype(jnp.bfloat16)
    bar = jnp.pad(ba_r, ((0, HPAD - H), (0, 0)))

    Z16 = Z.astype(jnp.bfloat16)      # halve Z's HBM->VMEM bytes; matmuls are bf16

    # ---- kernel 1: tiled projection + score precompute (tiny HBM intermediates)
    zw, el, ert = pl.pallas_call(
        _proj_kernel,
        grid=(ntiles,),
        in_specs=[
            pl.BlockSpec((tm, F), lambda i: (i, 0)),                # Z tile
            pl.BlockSpec((F, HD + EXT), lambda i: (0, 0)),          # W_full (whole)
            pl.BlockSpec((1, HD + EXT), lambda i: (0, 0)),          # b_full
            pl.BlockSpec((HPAD, F), lambda i: (0, 0)),              # war
            pl.BlockSpec((HPAD, 1), lambda i: (0, 0)),              # bar
        ],
        out_specs=[
            pl.BlockSpec((tm, HD), lambda i: (i, 0)),               # zw
            pl.BlockSpec((tm, EXT), lambda i: (i, 0)),              # e_l
            pl.BlockSpec((HPAD, tm), lambda i: (0, i)),             # e_r^T
        ],
        out_shape=[
            jax.ShapeDtypeStruct((N, HD), jnp.bfloat16),
            jax.ShapeDtypeStruct((N, EXT), jnp.float32),
            jax.ShapeDtypeStruct((HPAD, N), jnp.float32),
        ],
        compiler_params=pltpu.CompilerParams(
            dimension_semantics=("parallel",)),
    )(Z16, W_full, b_full, war, bar)

    # ---- kernel 2: row-tiled masked softmax + bspmm ----
    attn_kernel = functools.partial(_attn_kernel, num_heads=H, head_dim=D)
    out_hm = pl.pallas_call(
        attn_kernel,
        grid=(ntiles,),
        in_specs=[
            pl.BlockSpec((tm, EXT), lambda i: (i, 0)),              # e_l tile
            pl.BlockSpec((HPAD, N), lambda i: (0, 0)),              # e_r^T (whole)
            pl.BlockSpec((N, HD), lambda i: (0, 0)),                # zw keys (whole)
            pl.BlockSpec((tm, N), lambda i: (i, 0)),                # adj rows (int8)
        ],
        out_specs=pl.BlockSpec((tm, HD), lambda i: (i, 0)),
        out_shape=jax.ShapeDtypeStruct((N, HD), jnp.float32),
        compiler_params=pltpu.CompilerParams(
            dimension_semantics=("parallel",),
            vmem_limit_bytes=64 * 1024 * 1024),
    )(el, ert, zw, adj_mask)

    # torch-compatible [N, out_size, H] (downstream users that can consume the
    # lane-dense heads-major [N, H*D] should take `out_hm` directly instead).
    return jnp.transpose(out_hm.reshape(N, H, D), (0, 2, 1))


# ---------------------------------------------------------------------------
# Pure-JAX f32 reference (same math as the torch module, dense int8 mask)
# ---------------------------------------------------------------------------
def gatconv_reference(adj_mask, Z, W_t, b, a_l, a_r, out_size, num_heads):
    N = Z.shape[0]
    zw = Z @ W_t + b
    zh = zw.reshape(N, out_size, num_heads)
    el = jnp.sum(zh * a_l, axis=1)                                  # [N, H]
    er = jnp.sum(zh * a_r, axis=1)                                  # [N, H]
    e = el[:, None, :] + er[None, :, :]                             # [N, N, H]
    a = jnp.where(e >= 0.0, e, NEG_SLOPE * e)
    mask = (adj_mask != 0)[..., None]
    logits = jnp.where(mask, a, NEG_INF)
    m = jnp.max(logits, axis=1, keepdims=True)
    p = jnp.where(mask, jnp.exp(logits - m), 0.0)
    attn = p / jnp.sum(p, axis=1, keepdims=True)
    return jnp.einsum("ijh,jdh->idh", attn, zh)                     # [N, D, H]


if __name__ == "__main__":
    # small, TPU-friendly shapes consistent with the module; N=384 exercises
    # the multi-tile (3-step) grid path with TM=128.
    N, in_size, out_size, num_heads = 384, 128, 128, 4
    DH = out_size * num_heads
    gain = 2.0 ** 0.5  # nn.init.calculate_gain('relu')

    key = jax.random.PRNGKey(0)
    k_z, k_w, k_b, k_al, k_ar, k_adj = jax.random.split(key, 6)

    Z = jax.random.normal(k_z, (N, in_size), jnp.float32)

    # W.weight: xavier_normal_, gain=sqrt(2); stored transposed [in, out*H]
    std_w = gain * (2.0 / (in_size + DH)) ** 0.5
    W_t = std_w * jax.random.normal(k_w, (in_size, DH), jnp.float32)
    # nn.Linear default bias init: U(-1/sqrt(fan_in), 1/sqrt(fan_in))
    bound = 1.0 / (in_size ** 0.5)
    b = jax.random.uniform(k_b, (1, DH), jnp.float32, -bound, bound)

    # a_l, a_r: shape (1, out_size, H), xavier_normal_
    std_a = gain * (2.0 / (out_size * num_heads + num_heads)) ** 0.5
    a_l = std_a * jax.random.normal(k_al, (1, out_size, num_heads), jnp.float32)
    a_r = std_a * jax.random.normal(k_ar, (1, out_size, num_heads), jnp.float32)

    # A_hat: random sparse adjacency + self-loops, as a dense {0,1} int8 mask.
    # Self-loops guarantee every softmax row has a stored non-zero (required).
    adj_mask = jnp.logical_or(
        jax.random.bernoulli(k_adj, 0.1, (N, N)),
        jnp.eye(N, dtype=bool),
    ).astype(jnp.int8)

    out = gatconv_forward(adj_mask, Z, W_t, b, a_l, a_r, out_size, num_heads)
    out = jax.block_until_ready(out)

    ref = gatconv_reference(adj_mask, Z, W_t, b, a_l, a_r, out_size, num_heads)
    assert out.shape == (N, out_size, num_heads)
    max_err = float(jnp.max(jnp.abs(out - ref)))
    # bf16 MXU operands (f32 accumulate) + approx reciprocal -> bf16-level tolerance
    assert jnp.allclose(out, ref, rtol=3e-2, atol=3e-2), max_err

    print("KERNEL_OK")
</pallas_src>

<mosaic_0001>
module attributes {stable_mosaic.version = 11 : i64} {
  func.func @_proj_kernel(%arg0: i32, %arg1: memref<128x128xbf16, #tpu.memory_space<vmem>>, %arg2: memref<128x640xbf16, #tpu.memory_space<vmem>>, %arg3: memref<1x640xf32, #tpu.memory_space<vmem>>, %arg4: memref<8x128xbf16, #tpu.memory_space<vmem>>, %arg5: memref<8x1xf32, #tpu.memory_space<vmem>>, %arg6: memref<128x512xbf16, #tpu.memory_space<vmem>>, %arg7: memref<128x128xf32, #tpu.memory_space<vmem>>, %arg8: memref<8x128xf32, #tpu.memory_space<vmem>>) attributes {dimension_semantics = [#tpu.dimension_semantics<parallel>], iteration_bounds = array<i64: 3>, scalar_prefetch = 0 : i64, scratch_operands = 0 : i64, tpu.core_type = #tpu.core_type<tc>, window_params = [{transform_indices = @transform_0, window_bounds = array<i64: 128, 128>}, {pipeline_mode = #tpu.pipeline_mode<synchronous>, transform_indices = @transform_1, window_bounds = array<i64: 128, 640>}, {pipeline_mode = #tpu.pipeline_mode<synchronous>, transform_indices = @transform_2, window_bounds = array<i64: 1, 640>}, {pipeline_mode = #tpu.pipeline_mode<synchronous>, transform_indices = @transform_3, window_bounds = array<i64: 8, 128>}, {pipeline_mode = #tpu.pipeline_mode<synchronous>, transform_indices = @transform_4, window_bounds = array<i64: 8, 1>}, {transform_indices = @transform_5, window_bounds = array<i64: 128, 512>}, {transform_indices = @transform_6, window_bounds = array<i64: 128, 128>}, {transform_indices = @transform_7, window_bounds = array<i64: 8, 128>}]} {
    %c0 = arith.constant 0 : index
    %c0_0 = arith.constant 0 : index
    %0 = vector.load %arg1[%c0, %c0_0] : memref<128x128xbf16, #tpu.memory_space<vmem>>, vector<128x128xbf16>
    %c0_1 = arith.constant 0 : index
    %c0_2 = arith.constant 0 : index
    %1 = vector.load %arg2[%c0_1, %c0_2] : memref<128x640xbf16, #tpu.memory_space<vmem>>, vector<128x640xbf16>
    %cst = arith.constant dense<0.000000e+00> : vector<128x640xf32>
    %2 = tpu.matmul %0, %1, %cst {dimension_numbers = #tpu.dot_dimension_numbers<[1], [0], [0], [1], [0, 0, 1, 1], [], []>} : vector<128x128xbf16>, vector<128x640xbf16>, vector<128x640xf32> -> vector<128x640xf32>
    %c0_3 = arith.constant 0 : index
    %c0_4 = arith.constant 0 : index
    %3 = vector.load %arg3[%c0_3, %c0_4] : memref<1x640xf32, #tpu.memory_space<vmem>>, vector<1x640xf32>
    %4 = vector.broadcast %3 : vector<1x640xf32> to vector<128x640xf32>
    %5 = arith.addf %2, %4 : vector<128x640xf32>
    %6 = vector.extract_strided_slice %5 {offsets = [0, 0], sizes = [128, 512], strides = [1, 1]} : vector<128x640xf32> to vector<128x512xf32>
    %7 = arith.truncf %6 : vector<128x512xf32> to vector<128x512xbf16>
    %c0_5 = arith.constant 0 : index
    %c0_6 = arith.constant 0 : index
    %8 = vector.load %arg6[%c0_5, %c0_6] : memref<128x512xbf16, #tpu.memory_space<vmem>>, vector<128x512xbf16>
    tpu.vector_store %arg6[%c0_5, %c0_6], %7 {strides = array<i32>} : memref<128x512xbf16, #tpu.memory_space<vmem>>, vector<128x512xbf16>,
    %9 = vector.extract_strided_slice %5 {offsets = [0, 512], sizes = [128, 128], strides = [1, 1]} : vector<128x640xf32> to vector<128x128xf32>
    %c0_7 = arith.constant 0 : index
    %c0_8 = arith.constant 0 : index
    %10 = vector.load %arg7[%c0_7, %c0_8] : memref<128x128xf32, #tpu.memory_space<vmem>>, vector<128x128xf32>
    tpu.vector_store %arg7[%c0_7, %c0_8], %9 {strides = array<i32>} : memref<128x128xf32, #tpu.memory_space<vmem>>, vector<128x128xf32>,
    %c0_9 = arith.constant 0 : index
    %c0_10 = arith.constant 0 : index
    %11 = vector.load %arg4[%c0_9, %c0_10] : memref<8x128xbf16, #tpu.memory_space<vmem>>, vector<8x128xbf16>
    %cst_11 = arith.constant dense<0.000000e+00> : vector<8x128xf32>
    %12 = tpu.matmul %11, %0, %cst_11 {dimension_numbers = #tpu.dot_dimension_numbers<[1], [1], [0], [0], [0, 0, 1, 0], [], []>} : vector<8x128xbf16>, vector<128x128xbf16>, vector<8x128xf32> -> vector<8x128xf32>
    %c0_12 = arith.constant 0 : index
    %c0_13 = arith.constant 0 : index
    %13 = vector.load %arg5[%c0_12, %c0_13] : memref<8x1xf32, #tpu.memory_space<vmem>>, vector<8x1xf32>
    %14 = vector.broadcast %13 : vector<8x1xf32> to vector<8x128xf32>
    %15 = arith.addf %12, %14 : vector<8x128xf32>
    %c0_14 = arith.constant 0 : index
    %c0_15 = arith.constant 0 : index
    %16 = vector.load %arg8[%c0_14, %c0_15] : memref<8x128xf32, #tpu.memory_space<vmem>>, vector<8x128xf32>
    tpu.vector_store %arg8[%c0_14, %c0_15], %15 {strides = array<i32>} : memref<8x128xf32, #tpu.memory_space<vmem>>, vector<8x128xf32>,
    return
  }
  func.func @transform_0(%arg0: i32) -> (i32, i32) {
    %c0_i32 = arith.constant 0 : i32
    %c0_i32_0 = arith.constant 0 : i32
    return %arg0, %c0_i32 : i32, i32
  }
  func.func @transform_1(%arg0: i32) -> (i32, i32) {
    %c0_i32 = arith.constant 0 : i32
    %c0_i32_0 = arith.constant 0 : i32
    %c0_i32_1 = arith.constant 0 : i32
    return %c0_i32, %c0_i32_0 : i32, i32
  }
  func.func @transform_2(%arg0: i32) -> (i32, i32) {
    %c0_i32 = arith.constant 0 : i32
    %c0_i32_0 = arith.constant 0 : i32
    %c0_i32_1 = arith.constant 0 : i32
    return %c0_i32, %c0_i32_0 : i32, i32
  }
  func.func @transform_3(%arg0: i32) -> (i32, i32) {
    %c0_i32 = arith.constant 0 : i32
    %c0_i32_0 = arith.constant 0 : i32
    %c0_i32_1 = arith.constant 0 : i32
    return %c0_i32, %c0_i32_0 : i32, i32
  }
  func.func @transform_4(%arg0: i32) -> (i32, i32) {
    %c0_i32 = arith.constant 0 : i32
    %c0_i32_0 = arith.constant 0 : i32
    %c0_i32_1 = arith.constant 0 : i32
    return %c0_i32, %c0_i32_0 : i32, i32
  }
  func.func @transform_5(%arg0: i32) -> (i32, i32) {
    %c0_i32 = arith.constant 0 : i32
    %c0_i32_0 = arith.constant 0 : i32
    return %arg0, %c0_i32 : i32, i32
  }
  func.func @transform_6(%arg0: i32) -> (i32, i32) {
    %c0_i32 = arith.constant 0 : i32
    %c0_i32_0 = arith.constant 0 : i32
    return %arg0, %c0_i32 : i32, i32
  }
  func.func @transform_7(%arg0: i32) -> (i32, i32) {
    %c0_i32 = arith.constant 0 : i32
    %c0_i32_0 = arith.constant 0 : i32
    return %c0_i32, %arg0 : i32, i32
  }
}

</mosaic_0001>

<bundles_post_ra>
// kernel: tpu_custom_call.1
= control target key start
LH: loop header
LB: loop body
LE: loop exit
PB: predicated region body
PF: predicated region fallthrough
CT: control target
= control target key end

     0   :  { %s2554_s0 = inlined_call_operand.hbm [shape: bf16[384,128], index: 0, kind: input, shape index: {}]   ;;  %s2555_s1 = inlined_call_operand.hbm [shape: bf16[128,640], index: 1, kind: input, shape index: {}]   ;;  %s2556_s2 = inlined_call_operand.vmem [shape: f32[1,640], index: 2, kind: input, shape index: {}]   ;;  %s2557_s3 = inlined_call_operand.vmem [shape: bf16[8,128], index: 3, kind: input, shape index: {}]   ;;  %s2558_s4 = inlined_call_operand.vmem [shape: f32[8,1], index: 4, kind: input, shape index: {}]   ;;  %s2559_s5 = inlined_call_operand.hbm [shape: bf16[384,512], index: 5, kind: output, shape index: {0}]   ;;  %s2560_s6 = inlined_call_operand.hbm [shape: f32[384,128], index: 6, kind: output, shape index: {1}]   ;;  %s2561_s7 = inlined_call_operand.hbm [shape: f32[8,384], index: 7, kind: output, shape index: {2}]  }
   0x1   :  { %2567 = sst [smem:[#allocation15_spill]] %s2555_s1 }
   0x2   :  { %13 = vsyncpa [#allocation3], 0 }
   0x3   :  { %15 = vsyncpa [#allocation3 + $0x1], 0 }
   0x4   :  { %16 = vsyncpa [#allocation6], 0 }
   0x5   :  { %17 = vsyncpa [#allocation4], 0 }
   0x6   :  { %19 = vsyncpa [#allocation4 + $0x1], 0 }
   0x7   :  { %20 = vsyncpa [#allocation9], 0 }
   0x8   :  { %22 = vsyncpa [#allocation9 + $0x1], 0  ;;  %s2086_s24 = smov 0   ;;  %s2088_s25 = smov 0  }
   0x9   :  { %s2090_s26 = smov 0   ;;  %s2092_s27 = smov 0  }
   0xa LB: > { %s2107_s28 = sadd.s32 4294967295, %s2028_s27   ;;  %s2562_s29 = sadd.s32 4294967294, %s2028_s27   ;;  %s2028_s27 = sphi %s2092_s27, %s2586_s27   ;;  %s2024_s26 = sphi %s2090_s26, %s2585_s26   ;;  %s2020_s25 = sphi %s2088_s25, %s2584_s25   ;;  %s2016_s24 = sphi %s2086_s24, %s2583_s24  }
   0xb   : > { %p48_p0 = scmp.ne.s32.totalorder %s2020_s25, %s2016_s24  ;;  %p2563_p1 = scmp.eq.s32.totalorder %s2107_s28, 0 }
   0xc   : > { %p162_p3 = scmp.eq.s32.totalorder %s2562_s29, 2  ;;  %p1491_p5 = scmp.ge.s32.totalorder %s2028_s27, 1 }
   0xd   : > { %p2118_p4 = por %p2563_p1, %p48_p0  ;;  %p221_p7 = scmp.lt.s32.totalorder %s2028_s27, 4 }
   0xe   : > { %p2123_p6 = por %p162_p3, %p48_p0  ;;  %s2030_s10 = smov [#allocation5]  }
   0xf   : > { %s2568_s30 = scalar_select %p2118_p4, 1, 0 }
  0x10   : > { %s2569_s8 = scalar_select %p2123_p6, 1, 0 }
  0x11   : > { %p2128_p8 = pnand %p1491_p5, %p221_p7  ;;  %s233_s11 = sshll.u32 %s2030_s10, 4  ;;  %s234_s11 = int_to_ptr.vmem [resolvable:$true] %s233_s11 }
  0x12   : > { %s2141_s13 = sadd.s32 1, %s2028_s27   ;;  %s35_s14 = sadd.s32 1, %s2024_s26 }
  0x13   : > { %s2570_s9 = scalar_select %p2128_p8, 1, 0 }
  0x14   : > { %p1719_p9 = pneg %p2128_p8  ;;  %s32_s15 = ssub.s32 %s2028_s27, %s2141_s13 }
  0x15   : > { %s1861_s16 = scalar_lea.vmem %s234_s11, 5120  ;;  %p1869_p3 = scmp.lt.s32.totalorder %s234_s11, %s234_s11 }
  0x16   : > { %p2136_p10 = pnand %p1719_p9, %p2563_p1  ;;  %p1862_p12 = scmp.ne.s32.totalorder %s234_s11, %s1861_s16 }
  0x17   : > { %p1870_p5 = scmp.lt.s32.totalorder %s1861_s16, %s1861_s16 }
  0x18   : > { %p1852_p11 = pneg %p2136_p10 }
  0x19   : > { %p1871_p7 = por %p1870_p5, %p1869_p3 }
  0x1a   : > { %p1864_p13 = pnand %p1862_p12, %p1852_p11 }
  0x1c   : > { %p1865_p0 = pneg %p1864_p13 }
  0x1e   : > { %p1872_p2 = pnand %p1871_p7, %p1865_p0 }
  0x20   : > { %1875 = shalt.err (!%p1872_p2)
}
  0x21   : > { %s2031_s17 = smov 320   ;;  %s2032_s18 = smov 20  }
  0x22   : > { %s2572_s1 = sld [smem:[#allocation15_spill]]  ;;  %p33_p9 = scmp.eq.s32.totalorder %s32_s15, 0 }
  0x23   : > { %p42_p11 = scmp.ne.s32.totalorder %s2024_s26, %s2020_s25  ;;  %p43_p12 = scmp.eq.s32.totalorder %s2028_s27, 0 }
  0x24   : > { %p1738_p2 = scmp.lt.s32.totalorder %s2028_s27, 3  ;;  %p2573_p0 = scmp.eq.s32.totalorder %s2107_s28, 2 }
  0x25   : > { %s2158_s21 = scalar_select %p33_p9, %s2024_s26, %s35_s14  }
  0x26   : > { %p44_p13 = por %p43_p12, %p42_p11  ;;  %p2162_p3 = por %p2573_p0, %p42_p11 }
  0x27   : > { %s256_s23 = sand.u32 1, %s2024_s26   ;;  %s1594_s10 = sshll.u32 %s2028_s27, 10 }
  0x28   : > { %1722 = dma.hbm_to_vmem [thread:$0]  (!%p2136_p10), %s2572_s1, 5120, %s234_s11, [#allocation6], %s2031_s17, %s2031_s17, %s2032_s18  }
  0x29   : > { %s2574_s22 = scalar_select %p2162_p3, 1, 0 }
  0x2a   : > { %s1494_s16 = sshll.u32 %s256_s23, 6  ;;  %s2171_s19 = scalar_lea.hbm %s2554_s0, %s1594_s10 }
  0x2b   : > { %s260_s11 = scalar_lea.vmem [#allocation2], %s1494_s16  ;;  %p2173_p10 = pnand %p1738_p2, %p44_p13 }
  0x2c   : > { %s267_s14 = sshll.u32 %s260_s11, 4  ;;  %s2179_s17 = scalar_lea.sflag [#allocation3], %s256_s23  ;;  %s2177_s14 = int_to_ptr.vmem [resolvable:$true] %s267_s14 }
  0x2d   : > { %s1876_s18 = scalar_lea.hbm %s2171_s19, 1024  ;;  %p1878_p7 = pneg %p2173_p10 }
  0x2e   : > { %p1877_p5 = scmp.ne.s32.totalorder %s2171_s19, %s1876_s18  ;;  %s1881_s10 = scalar_lea.hbm %s2554_s0, 3072 }
  0x2f   : > { %p1882_p12 = scmp.lt.s32.totalorder %s2171_s19, %s2554_s0  ;;  %p1883_p2 = scmp.lt.s32.totalorder %s1881_s10, %s1876_s18 }
  0x30   : > { %p1879_p9 = pnand %p1878_p7, %p1877_p5 }
  0x31   : > { %p1884_p13 = por %p1883_p2, %p1882_p12 }
  0x32   : > { %p1880_p11 = pneg %p1879_p9 }
  0x34   : > { %p1885_p0 = pnand %p1884_p13, %p1880_p11 }
  0x36   : > { %1888 = shalt.err (!%p1885_p0)
}
  0x37   : > { %s1889_s23 = scalar_lea.vmem %s2177_s14, 1024  ;;  %s2033_s11 = smov [#allocation2]  }
  0x38   : > { %p1890_p1 = scmp.ne.s32.totalorder %s2177_s14, %s1889_s23  ;;  %s1894_s1 = sshll.u32 %s2033_s11, 4  ;;  %s1895_s1 = int_to_ptr.vmem [resolvable:$false] %s1894_s1 }
  0x39   : > { %s1896_s29 = scalar_lea.vmem %s1895_s1, 2048  ;;  %p1897_p9 = scmp.lt.s32.totalorder %s2177_s14, %s1895_s1 }
  0x3a   : > { %p1892_p6 = pnand %p1890_p1, %p1878_p7  ;;  %p1898_p3 = scmp.lt.s32.totalorder %s1896_s29, %s1889_s23 }
  0x3c   : > { %p1893_p5 = pneg %p1892_p6  ;;  %p1899_p4 = por %p1898_p3, %p1897_p9 }
  0x3e   : > { %p1900_p8 = pnand %p1899_p4, %p1893_p5 }
  0x40   : > { %1903 = shalt.err (!%p1900_p8)
}
  0x41   : > { %s2034_s18 = smov 64   ;;  %s2035_s20 = smov 4  }
  0x42   : > { %1726 = dma.hbm_to_vmem [thread:$0]  (!%p2173_p10), %s2171_s19, 1024, %s2177_s14, %s2179_s17, %s2034_s18, %s2034_s18, %s2035_s20  }
  0x43   : > { %p2576_p1 = scmp.ne.s32.totalorder %s2570_s9, 0 }
  0x44   : > { %s2203_s10 = sand.u32 (!%p2576_p1), 1, %s2020_s25   ;;  %p2577_p4 = scmp.ne.s32.totalorder (!%p2576_p1), %s2568_s30, 0 }
  0x45   : > { %279 = sbr.rel (%p2576_p1) target bundleno = 446 (0x1be), region = 40  ;;  %s1498_s1 = sshll.u32 (!%p2576_p1), %s2203_s10, 6 }
  0x46   : > { %s282_s16 = scalar_lea.sflag (!%p2576_p1), [#allocation3], %s2203_s10  ;;  %s2207_s12 = scalar_lea.vmem (!%p2576_p1), [#allocation2], %s1498_s1 }
  0x4a   : > { %1999 = dma.done.wait (%p2577_p4), %s282_s16, 1024  }
  0x4b   : > { %2001 = vsyncadd (%p2577_p4), %s282_s16, 4294966272  ;;  %p2578_p6 = scmp.eq.s32.totalorder %s2107_s28, 0 }
  0x4d   : > { %2003 = dma.done.wait (%p2578_p6), [#allocation6], 5120   ;;  %p2579_p8 = pmov %p2578_p6 }
  0x4e   : > { %v2036_v0 = vmov 0   ;;  %v1786_v1 = vld [vmem:[#allocation5 + $0x11c] ss:$20 sps:$4 sm:$0xff]   ;;  %v1788_v2 = vld [vmem:[#allocation5 + $0x118] ss:$20 sps:$4 sm:$0xff]   ;;  %v2221_v31 = vld [vmem:[%s2207_s12] sm:$0xff]   ;;  %v400_v52 = vlaneseq }
  0x4f   : > { %2005 = vsyncadd (%p2579_p8), [#allocation6], 4294962176  ;;  %713 = vmatprep.mubr.bf16.mxu0 %v2036_v0  ;;  %826 = vmatprep.mubr.bf16.mxu1 %v2036_v0  ;;  %v1789_v3 = vld [vmem:[#allocation5 + $0xf4] ss:$20 sps:$4 sm:$0xff]   ;;  %v1791_v4 = vld [vmem:[#allocation5 + $0xf0] ss:$20 sps:$4 sm:$0xff]  }
  0x50   : > { %1785 = vset.pattern.permute.xlu0 %v2036_v0  ;;  %681 = vmatprep.subr.bf16.mxu0 %v1786_v1  ;;  %v1792_v5 = vld [vmem:[#allocation5 + $0xcc] ss:$20 sps:$4 sm:$0xff]   ;;  %v1794_v6 = vld [vmem:[#allocation5 + $0xc8] ss:$20 sps:$4 sm:$0xff]   ;;  %v1795_v7 = vld [vmem:[#allocation5 + $0xa4] ss:$20 sps:$4 sm:$0xff]  }
  0x51   : > { %682 = vmatpush1.bf16.msra.mxu0 %v1788_v2  ;;  %v1806_v8 = vld [vmem:[#allocation5 + $0x124] ss:$20 sps:$4 sm:$0xff]   ;;  %v1809_v9 = vld [vmem:[#allocation5 + $0x120] ss:$20 sps:$4 sm:$0xff]   ;;  %v1798_v11 = vld [vmem:[#allocation5 + $0x7c] ss:$20 sps:$4 sm:$0xff]  }
  0x52   : > { %683 = vmatprep.subr.bf16.mxu0 %v1789_v3  ;;  %v1797_v10 = vld [vmem:[#allocation5 + $0xa0] ss:$20 sps:$4 sm:$0xff]   ;;  %794 = vmatprep.subr.bf16.mxu1 %v1806_v8  ;;  %v1812_v12 = vld [vmem:[#allocation5 + $0xfc] ss:$20 sps:$4 sm:$0xff]   ;;  %v1815_v13 = vld [vmem:[#allocation5 + $0xf8] ss:$20 sps:$4 sm:$0xff]  }
  0x53   : > { %795 = vmatpush1.bf16.msra.mxu1 %v1809_v9  ;;  %v1800_v14 = vld [vmem:[#allocation5 + $0x78] ss:$20 sps:$4 sm:$0xff]   ;;  %v1817_v15 = vld [vmem:[#allocation5 + $0xd4] ss:$20 sps:$4 sm:$0xff]   ;;  %v1820_v17 = vld [vmem:[#allocation5 + $0xd0] ss:$20 sps:$4 sm:$0xff]  }
  0x54   : > { %796 = vmatprep.subr.bf16.mxu1 %v1812_v12  ;;  %v1801_v16 = vld [vmem:[#allocation5 + $0x54] ss:$20 sps:$4 sm:$0xff]   ;;  %v1821_v18 = vld [vmem:[#allocation5 + $0xac] ss:$20 sps:$4 sm:$0xff]   ;;  %v1803_v19 = vld [vmem:[#allocation5 + $0x50] ss:$20 sps:$4 sm:$0xff]  }
  0x55   : > { %684 = vmatpush1.bf16.msra.mxu0 %v1791_v4  ;;  %v1804_v20 = vld [vmem:[#allocation5 + $0x2c] ss:$20 sps:$4 sm:$0xff]   ;;  %v1823_v21 = vld [vmem:[#allocation5 + $0xa8] ss:$20 sps:$4 sm:$0xff]   ;;  %v1825_v22 = vld [vmem:[#allocation5 + $0x84] ss:$20 sps:$4 sm:$0xff]  }
  0x56   : > { %685 = vmatprep.subr.bf16.mxu0 %v1792_v5  ;;  %v1808_v23 = vld [vmem:[#allocation5 + $0x28] ss:$20 sps:$4 sm:$0xff]   ;;  %v1810_v24 = vld [vmem:[#allocation5 + $0x4] ss:$20 sps:$4 sm:$0xff]   ;;  %v1828_v25 = vld [vmem:[#allocation5 + $0x80] ss:$20 sps:$4 sm:$0xff]  }
  0x57   : > { %797 = vmatpush1.bf16.msra.mxu1 %v1815_v13  ;;  %v1829_v26 = vld [vmem:[#allocation5 + $0x5c] ss:$20 sps:$4 sm:$0xff]   ;;  %v1814_v27 = vld [vmem:[#allocation5] ss:$20 sps:$4 sm:$0xff]   ;;  %v1831_v29 = vld [vmem:[#allocation5 + $0x58] ss:$20 sps:$4 sm:$0xff]  }
  0x58   : > { %798 = vmatprep.subr.bf16.mxu1 %v1817_v15  ;;  %v1819_v28 = vld [vmem:[#allocation5 + $0x128] ss:$20 sps:$4 sm:$0xff]   ;;  %v1827_v32 = vld [vmem:[#allocation5 + $0x100] ss:$20 sps:$4 sm:$0xff]   ;;  %v1836_v33 = vld [vmem:[#allocation5 + $0x30] ss:$20 sps:$4 sm:$0xff]  }
  0x59   : > { %686 = vmatpush1.bf16.msra.mxu0 %v1794_v6  ;;  %v1833_v30 = vld [vmem:[#allocation5 + $0x34] ss:$20 sps:$4 sm:$0xff]   ;;  %v1837_v34 = vld [vmem:[#allocation5 + $0xc] ss:$20 sps:$4 sm:$0xff]   ;;  %v1841_v39 = vld [vmem:[#allocation5 + $0xb0] ss:$20 sps:$4 sm:$0xff]  }
  0x5a   : > { %687 = vmatprep.subr.bf16.mxu0 %v1795_v7  ;;  %v1835_v35 = vld [vmem:[#allocation5 + $0xd8] ss:$20 sps:$4 sm:$0xff]   ;;  %v1839_v36 = vld [vmem:[#allocation5 + $0x8] ss:$20 sps:$4 sm:$0xff]   ;;  %v1245_v37 = vld [vmem:[%s2558_s4] sm:$0xff]  ;;  %v2037_v40 = vmov 0.0  }
  0x5b   : > { %799 = vmatpush1.bf16.msra.mxu1 %v1820_v17  ;;  %v2229_v38 = vld [vmem:[%s2207_s12 + $0x8] sm:$0xff]   ;;  %1248 = vperm.xlu0 %1785, %v1245_v37   ;;  %v2233_v41 = vld [vmem:[%s2207_s12 + $0x38] sm:$0xff]   ;;  %v1832_v43 = vld [vmem:[%s2207_s12 + $0x10] sm:$0xff]   ;;  %vm2038_vm0 = vmmov 0   ;;  %v2275_v53 = vshrl.u32 %v400_v52, 7  ;;  %s1500_s23 = sshll.u32 %s2203_s10, 8 }
  0x5c   : > { %800 = vmatprep.subr.bf16.mxu1 %v1821_v18  ;;  %v1844_v42 = vld [vmem:[#allocation5 + $0x88] ss:$20 sps:$4 sm:$0xff]   ;;  %v1847_v44 = vld [vmem:[#allocation5 + $0x60] ss:$20 sps:$4 sm:$0xff]   ;;  %v1848_v46 = vld [vmem:[#allocation5 + $0x38] ss:$20 sps:$4 sm:$0xff]  }
  0x5d   : > { %688 = vmatpush1.bf16.msra.mxu0 %v1797_v10  ;;  %v1845_v45 = vld [vmem:[%s2207_s12 + $0x30] sm:$0xff]   ;;  %v1840_v47 = vld [vmem:[%s2207_s12 + $0x18] sm:$0xff]   ;;  %v1846_v49 = vld [vmem:[%s2207_s12 + $0x28] sm:$0xff]   ;;  %v402_v54 = vsub.s32 0, %v2275_v53  ;;  %v406_v55 = vsub.s32 1, %v2275_v53  ;;  %v410_v63 = vsub.s32 2, %v2275_v53 }
  0x5e   : > { %689 = vmatprep.subr.bf16.mxu0 %v1798_v11  ;;  %v1849_v48 = vld [vmem:[#allocation5 + $0x10] ss:$20 sps:$4 sm:$0xff]   ;;  %v1244_v51 = vld [vmem:[%s2557_s3] sm:$0xf]  ;;  %v414_v2 = vsub.s32 3, %v2275_v53  ;;  %s2295_s11 = scalar_lea.vmem [#allocation7], %s1500_s23 }
  0x5f   : > { %801 = vmatpush1.bf16.msra.mxu1 %v1823_v21  ;;  %v1843_v50 = vld [vmem:[%s2207_s12 + $0x20] sm:$0xff]   ;;  %s1501_s29 = sshll.u32 %s2203_s10, 7  ;;  %s1502_s20 = sshll.u32 %s2203_s10, 3 }
  0x60   : > { %802 = vmatprep.subr.bf16.mxu1 %v1825_v22  ;;  %v2282_v56 = vld [vmem:[%s2556_s2] sm:$0x1f]  ;;  %s2396_s18 = scalar_lea.vmem [#allocation8], %s1501_s29  ;;  %s1628_s1 = sshll.u32 %s2107_s28, 12 }
  0x61   : > { %690 = vmatpush1.bf16.msra.mxu0 %v1800_v14  ;;  %v2285_v57 = vrot.slane %v2282_v56, %v402_v54  ;;  %v2288_v58 = vrot.slane %v2282_v56, %v406_v55  ;;  %v2301_v6 = vrot.slane %v2282_v56, %v410_v63  ;;  %v2304_v9 = vrot.slane %v2282_v56, %v414_v2  ;;  %s1317_s16 = sshll.u32 %s2295_s11, 4  ;;  %s2418_s9 = scalar_lea.hbm %s2559_s5, %s1628_s1  ;;  %s2420_s16 = int_to_ptr.vmem [resolvable:$true] %s1317_s16 }
  0x62   : > { %691 = vmatprep.subr.bf16.mxu0 %v1801_v16  ;;  %s2427_s19 = scalar_lea.vmem [#allocation10], %s1502_s20  ;;  %s1293_s14 = scalar_lea.sflag [#allocation4], %s2203_s10 }
  0x63   : > { %803 = vmatpush1.bf16.msra.mxu1 %v1828_v25  ;;  %s1904_s15 = scalar_lea.vmem %s2420_s16, 4096  ;;  %p2580_p10 = scmp.ne.s32.totalorder %s2574_s22, 0 }
  0x64   : > { %804 = vmatprep.subr.bf16.mxu1 %v1829_v26  ;;  %p1905_p3 = scmp.ne.s32.totalorder %s2420_s16, %s1904_s15  ;;  %s2039_s17 = smov [#allocation7]  }
  0x65   : > { %692 = vmatpush1.bf16.msra.mxu0 %v1803_v19  ;;  %s1908_s23 = sshll.u32 %s2039_s17, 4  ;;  %s1909_s23 = int_to_ptr.vmem [resolvable:$false] %s1908_s23 }
  0x66   : > { %693 = vmatprep.subr.bf16.mxu0 %v1804_v20  ;;  %p1906_p7 = pnand %p1905_p3, %p2580_p10  ;;  %s1910_s29 = scalar_lea.vmem %s1909_s23, 8192 }
  0x67   : > { %805 = vmatpush1.bf16.msra.mxu1 %v1831_v29  ;;  %p1911_p12 = scmp.lt.s32.totalorder %s2420_s16, %s1909_s23  ;;  %p1912_p2 = scmp.lt.s32.totalorder %s1910_s29, %s1904_s15 }
  0x68   : > { %806 = vmatprep.subr.bf16.mxu1 %v1833_v30  ;;  %p1907_p11 = pneg %p1906_p7 }
  0x69   : > { %694 = vmatpush1.bf16.msra.mxu0 %v1808_v23  ;;  %p1913_p13 = por %p1912_p2, %p1911_p12 }
  0x6a   : > { %695 = vmatprep.subr.bf16.mxu0 %v1810_v24 }
  0x6b   : > { %807 = vmatpush1.bf16.msra.mxu1 %v1836_v33  ;;  %p1914_p0 = pnand %p1913_p13, %p1907_p11 }
  0x6c   : > { %808 = vmatprep.subr.bf16.mxu1 %v1837_v34 }
  0x6d   : > { %696 = vmatpush1.bf16.msra.mxu0 %v1814_v27 }
  0x6e   : > { %1655 = vmatprep.subr.bf16.mxu0 %v1819_v28 }
  0x6f   : > { %809 = vmatpush1.bf16.msra.mxu1 %v1839_v36 }
  0x70   : > { %714 = vmatmul.mubr.bf16.vlgmr.msra.gmra.mxu0 %v2221_v31  ;;  %1687 = vmatprep.subr.bf16.mxu1 %v2037_v40 }
  0x71   : > { %1656 = vmatpush3.bf16.msra.mxu0 %v1819_v28  ;;  %723 = vmatprep.mubr.bf16.mxu0 %v2036_v0 }
  0x72   : > { %1657 = vmatprep.subr.bf16.mxu0 %v1827_v32  ;;  %827 = vmatmul.mubr.bf16.vlgmr.msra.gmra.mxu1 %v2221_v31 }
  0x73   : > { %1688 = vmatpush3.bf16.xpose.msra.mxu1 %v2233_v41  ;;  %836 = vmatprep.mubr.bf16.mxu1 %v2036_v0 }
  0x74   : > { %1689 = vmatprep.subr.bf16.mxu1 %v2037_v40 }
  0x75   : > { %1658 = vmatpush3.bf16.msra.mxu0 %v1827_v32 }
  0x76   : > { %1659 = vmatprep.subr.bf16.mxu0 %v1835_v35 }
  0x78   : > { %724 = vmatmul.mubr.bf16.gmra.mxu0 %v2229_v38 }
  0x79   : > { %733 = vmatprep.mubr.bf16.mxu0 %v2036_v0  ;;  %1660 = vmatpush3.bf16.msra.mxu0 %v1835_v35 }
  0x7a   : > { %1661 = vmatprep.subr.bf16.mxu0 %v1841_v39  ;;  %837 = vmatmul.mubr.bf16.gmra.mxu1 %v2229_v38 }
  0x7b   : > { %1690 = vmatpush3.bf16.xpose.msra.mxu1 %v1845_v45  ;;  %846 = vmatprep.mubr.bf16.mxu1 %v2036_v0 }
  0x7c   : > { %1691 = vmatprep.subr.bf16.mxu1 %v2037_v40 }
  0x7d   : > { %1662 = vmatpush3.bf16.msra.mxu0 %v1841_v39 }
  0x7e   : > { %1663 = vmatprep.subr.bf16.mxu0 %v1844_v42 }
  0x80   : > { %734 = vmatmul.mubr.bf16.gmra.mxu0 %v1832_v43 }
  0x81   : > { %743 = vmatprep.mubr.bf16.mxu0 %v2036_v0  ;;  %1664 = vmatpush3.bf16.msra.mxu0 %v1844_v42 }
  0x82   : > { %1665 = vmatprep.subr.bf16.mxu0 %v1847_v44  ;;  %847 = vmatmul.mubr.bf16.gmra.mxu1 %v1832_v43 }
  0x83   : > { %1692 = vmatpush3.bf16.xpose.msra.mxu1 %v1846_v49  ;;  %856 = vmatprep.mubr.bf16.mxu1 %v2036_v0 }
  0x84   : > { %1693 = vmatprep.subr.bf16.mxu1 %v2037_v40 }
  0x85   : > { %1666 = vmatpush3.bf16.msra.mxu0 %v1847_v44 }
  0x86   : > { %1667 = vmatprep.subr.bf16.mxu0 %v1848_v46 }
  0x88   : > { %744 = vmatmul.mubr.bf16.gmra.mxu0 %v1840_v47 }
  0x89   : > { %753 = vmatprep.mubr.bf16.mxu0 %v2036_v0  ;;  %1668 = vmatpush3.bf16.msra.mxu0 %v1848_v46 }
  0x8a   : > { %1669 = vmatprep.subr.bf16.mxu0 %v1849_v48  ;;  %857 = vmatmul.mubr.bf16.gmra.mxu1 %v1840_v47 }
  0x8b   : > { %1694 = vmatpush3.bf16.xpose.msra.mxu1 %v1843_v50  ;;  %866 = vmatprep.mubr.bf16.mxu1 %v2036_v0 }
  0x8c   : > { %1695 = vmatprep.subr.bf16.mxu1 %v2037_v40 }
  0x8d   : > { %1670 = vmatpush3.bf16.msra.mxu0 %v1849_v48 }
  0x90   : > { %754 = vmatmul.mubr.bf16.gmra.mxu0 %v1843_v50 }
  0x91   : > { %763 = vmatprep.mubr.bf16.mxu0 %v2036_v0 }
  0x92   : > { %867 = vmatmul.mubr.bf16.gmra.mxu1 %v1843_v50 }
  0x93   : > { %1696 = vmatpush3.bf16.xpose.msra.mxu1 %v1840_v47  ;;  %876 = vmatprep.mubr.bf16.mxu1 %v2036_v0 }
  0x94   : > { %1697 = vmatprep.subr.bf16.mxu1 %v2037_v40 }
  0x98   : > { %764 = vmatmul.mubr.bf16.gmra.mxu0 %v1846_v49 }
  0x99   : > { %773 = vmatprep.mubr.bf16.mxu0 %v2036_v0 }
  0x9a   : > { %877 = vmatmul.mubr.bf16.gmra.mxu1 %v1846_v49 }
  0x9b   : > { %1698 = vmatpush3.bf16.xpose.msra.mxu1 %v1832_v43  ;;  %886 = vmatprep.mubr.bf16.mxu1 %v2036_v0 }
  0x9c   : > { %1699 = vmatprep.subr.bf16.mxu1 %v2037_v40 }
  0xa0   : > { %774 = vmatmul.mubr.bf16.gmra.mxu0 %v1845_v45 }
  0xa1   : > { %783 = vmatprep.mubr.bf16.mxu0 %v2036_v0 }
  0xa2   : > { %887 = vmatmul.mubr.bf16.gmra.mxu1 %v1845_v45 }
  0xa3   : > { %1700 = vmatpush3.bf16.xpose.msra.mxu1 %v2229_v38  ;;  %896 = vmatprep.mubr.bf16.mxu1 %v2036_v0 }
  0xa4   : > { %1701 = vmatprep.subr.bf16.mxu1 %v2037_v40 }
  0xa8   : > { %784 = vmatmul.mubr.bf16.gmra.mxu0 %v2233_v41 }
  0xa9   : > { %1671 = vmatprep.mubr.bf16.mxu0 %v2221_v31 }
  0xaa   : > { %897 = vmatmul.mubr.bf16.gmra.mxu1 %v2233_v41 }
  0xab   : > { %1702 = vmatpush3.bf16.xpose.msra.mxu1 %v2221_v31  ;;  %1703 = vmatprep.mubr.msk.bf16.mxu1 %vm2038_vm0, %v2037_v40 }
  0xb0   : > { %1672 = vmatmul.mubr.bf16.vlgmr.msra.gmra.mxu0 %v2229_v38 }
  0xb1   : > { %1675 = vmatprep.mubr.bf16.mxu0 %v1832_v43 }
  0xb2   : > { %1704 = vmatmul.mubr.bf16.vlgmr.msra.gmra.mxu1 %v1244_v51 }
  0xb8   : > { %1676 = vmatmul.mubr.bf16.gmra.mxu0 %v1840_v47 }
  0xb9   : > { %1679 = vmatprep.mubr.bf16.mxu0 %v1843_v50 }
  0xc0   : > { %1680 = vmatmul.mubr.bf16.gmra.mxu0 %v1846_v49 }
  0xc1   : > { %1683 = vmatprep.mubr.bf16.mxu0 %v1845_v45 }
  0xc8   : > { %1684 = vmatmul.mubr.bf16.gmra.mxu0 %v2233_v41 }
 0x130   : > { %v715_v59 = vpop.f32.mrf.mxu0 }
 0x131   : > { %v716_v61 = vadd.f32 %v715_v59, %v2285_v57 }
 0x132   : > { %v717_v60 = vpop.f32.mrf.mxu0  ;;  %v828_v11 = vpop.f32.mrf.mxu1 }
 0x133   : > { %v718_v62 = vadd.f32 %v717_v60, %v2288_v58  ;;  %v829_v14 = vadd.f32 %v828_v11, %v2301_v6 }
 0x134   : > { %v719_v0 = vpop.f32.mrf.mxu0  ;;  %v830_v16 = vpop.f32.mrf.mxu1 }
 0x135   : > { %v1595_v1 = vpack.c.bf16 %v718_v62, %v716_v61  ;;  %v720_v4 = vadd.f32 %v719_v0, %v2285_v57  ;;  %v831_v18 = vadd.f32 %v830_v16, %v2304_v9 }
 0x136   : > { %v721_v3 = vpop.f32.mrf.mxu0  ;;  %v832_v20 = vpop.f32.mrf.mxu1 }
 0x137   : > { %1196 = vst [vmem:[%s2295_s11] sm:$0xff] %v1595_v1  ;;  %v722_v5 = vadd.f32 %v721_v3, %v2288_v58  ;;  %v1596_v23 = vpack.c.bf16 %v831_v18, %v829_v14  ;;  %v833_v24 = vadd.f32 %v832_v20, %v2301_v6 }
 0x138   : > { %v725_v7 = vpop.f32.mrf.mxu0  ;;  %v834_v26 = vpop.f32.mrf.mxu1 }
 0x139   : > { %v1597_v8 = vpack.c.bf16 %v722_v5, %v720_v4  ;;  %v726_v12 = vadd.f32 %v725_v7, %v2285_v57  ;;  %1197 = vst [vmem:[%s2295_s11 + $0x8] sm:$0xff] %v1596_v23  ;;  %v835_v28 = vadd.f32 %v834_v26, %v2304_v9 }
 0x13a   : > { %v727_v10 = vpop.f32.mrf.mxu0  ;;  %v838_v30 = vpop.f32.mrf.mxu1 }
 0x13b   : > { %1198 = vst [vmem:[%s2295_s11 + $0x10] sm:$0xff] %v1597_v8  ;;  %v728_v13 = vadd.f32 %v727_v10, %v2288_v58  ;;  %v1598_v33 = vpack.c.bf16 %v835_v28, %v833_v24  ;;  %v839_v34 = vadd.f32 %v838_v30, %v2301_v6 }
 0x13c   : > { %v729_v15 = vpop.f32.mrf.mxu0  ;;  %v840_v36 = vpop.f32.mrf.mxu1 }
 0x13d   : > { %v1599_v17 = vpack.c.bf16 %v728_v13, %v726_v12  ;;  %v730_v21 = vadd.f32 %v729_v15, %v2285_v57  ;;  %1199 = vst [vmem:[%s2295_s11 + $0x18] sm:$0xff] %v1598_v33  ;;  %v841_v38 = vadd.f32 %v840_v36, %v2304_v9 }
 0x13e   : > { %v731_v19 = vpop.f32.mrf.mxu0  ;;  %v842_v40 = vpop.f32.mrf.mxu1 }
 0x13f   : > { %1200 = vst [vmem:[%s2295_s11 + $0x20] sm:$0xff] %v1599_v17  ;;  %v732_v22 = vadd.f32 %v731_v19, %v2288_v58  ;;  %v1600_v43 = vpack.c.bf16 %v841_v38, %v839_v34  ;;  %v843_v44 = vadd.f32 %v842_v40, %v2301_v6 }
 0x140   : > { %v735_v25 = vpop.f32.mrf.mxu0  ;;  %v844_v46 = vpop.f32.mrf.mxu1 }
 0x141   : > { %v1601_v27 = vpack.c.bf16 %v732_v22, %v730_v21  ;;  %v736_v31 = vadd.f32 %v735_v25, %v2285_v57  ;;  %1201 = vst [vmem:[%s2295_s11 + $0x28] sm:$0xff] %v1600_v43  ;;  %v845_v48 = vadd.f32 %v844_v46, %v2304_v9 }
 0x142   : > { %v737_v29 = vpop.f32.mrf.mxu0  ;;  %v848_v50 = vpop.f32.mrf.mxu1 }
 0x143   : > { %1202 = vst [vmem:[%s2295_s11 + $0x30] sm:$0xff] %v1601_v27  ;;  %v738_v32 = vadd.f32 %v737_v29, %v2288_v58  ;;  %v1602_v54 = vpack.c.bf16 %v845_v48, %v843_v44  ;;  %v849_v55 = vadd.f32 %v848_v50, %v2301_v6 }
 0x144   : > { %v739_v35 = vpop.f32.mrf.mxu0  ;;  %v850_v60 = vpop.f32.mrf.mxu1 }
 0x145   : > { %v1603_v37 = vpack.c.bf16 %v738_v32, %v736_v31  ;;  %v740_v41 = vadd.f32 %v739_v35, %v2285_v57  ;;  %1203 = vst [vmem:[%s2295_s11 + $0x38] sm:$0xff] %v1602_v54  ;;  %v851_v62 = vadd.f32 %v850_v60, %v2304_v9 }
 0x146   : > { %v741_v39 = vpop.f32.mrf.mxu0  ;;  %v852_v0 = vpop.f32.mrf.mxu1 }
 0x147   : > { %1204 = vst [vmem:[%s2295_s11 + $0x40] sm:$0xff] %v1603_v37  ;;  %v742_v42 = vadd.f32 %v741_v39, %v2288_v58  ;;  %v1604_v3 = vpack.c.bf16 %v851_v62, %v849_v55  ;;  %v853_v4 = vadd.f32 %v852_v0, %v2301_v6 }
 0x148   : > { %v745_v45 = vpop.f32.mrf.mxu0  ;;  %v854_v7 = vpop.f32.mrf.mxu1 }
 0x149   : > { %v1605_v47 = vpack.c.bf16 %v742_v42, %v740_v41  ;;  %v746_v51 = vadd.f32 %v745_v45, %v2285_v57  ;;  %1205 = vst [vmem:[%s2295_s11 + $0x48] sm:$0xff] %v1604_v3  ;;  %v855_v10 = vadd.f32 %v854_v7, %v2304_v9 }
 0x14a   : > { %v747_v49 = vpop.f32.mrf.mxu0  ;;  %v858_v12 = vpop.f32.mrf.mxu1 }
 0x14b   : > { %1206 = vst [vmem:[%s2295_s11 + $0x50] sm:$0xff] %v1605_v47  ;;  %v748_v52 = vadd.f32 %v747_v49, %v2288_v58  ;;  %v1606_v15 = vpack.c.bf16 %v855_v10, %v853_v4  ;;  %v859_v16 = vadd.f32 %v858_v12, %v2301_v6  ;;  %v418_v12 = vsub.s32 4, %v2275_v53 }
 0x14c   : > { %v749_v59 = vpop.f32.mrf.mxu0  ;;  %v860_v18 = vpop.f32.mrf.mxu1 }
 0x14d   : > { %v1607_v61 = vpack.c.bf16 %v748_v52, %v746_v51  ;;  %v750_v1 = vadd.f32 %v749_v59, %v2285_v57  ;;  %1207 = vst [vmem:[%s2295_s11 + $0x58] sm:$0xff] %v1606_v15  ;;  %v861_v20 = vadd.f32 %v860_v18, %v2304_v9  ;;  %v2384_v53 = vrot.slane %v2282_v56, %v418_v12 }
 0x14e   : > { %v751_v63 = vpop.f32.mrf.mxu0  ;;  %v862_v22 = vpop.f32.mrf.mxu1 }
 0x14f   : > { %1208 = vst [vmem:[%s2295_s11 + $0x60] sm:$0xff] %v1607_v61  ;;  %v752_v2 = vadd.f32 %v751_v63, %v2288_v58  ;;  %v1608_v25 = vpack.c.bf16 %v861_v20, %v859_v16  ;;  %v863_v26 = vadd.f32 %v862_v22, %v2301_v6 }
 0x150   : > { %v755_v5 = vpop.f32.mrf.mxu0  ;;  %v864_v28 = vpop.f32.mrf.mxu1 }
 0x151   : > { %v1609_v8 = vpack.c.bf16 %v752_v2, %v750_v1  ;;  %v756_v13 = vadd.f32 %v755_v5, %v2285_v57  ;;  %1209 = vst [vmem:[%s2295_s11 + $0x68] sm:$0xff] %v1608_v25  ;;  %v865_v30 = vadd.f32 %v864_v28, %v2304_v9 }
 0x152   : > { %v757_v11 = vpop.f32.mrf.mxu0  ;;  %v868_v32 = vpop.f32.mrf.mxu1 }
 0x153   : > { %1210 = vst [vmem:[%s2295_s11 + $0x70] sm:$0xff] %v1609_v8  ;;  %v758_v14 = vadd.f32 %v757_v11, %v2288_v58  ;;  %v1610_v35 = vpack.c.bf16 %v865_v30, %v863_v26  ;;  %v869_v36 = vadd.f32 %v868_v32, %v2301_v6 }
 0x154   : > { %v759_v17 = vpop.f32.mrf.mxu0  ;;  %v870_v38 = vpop.f32.mrf.mxu1 }
 0x155   : > { %v1611_v19 = vpack.c.bf16 %v758_v14, %v756_v13  ;;  %v760_v23 = vadd.f32 %v759_v17, %v2285_v57  ;;  %1211 = vst [vmem:[%s2295_s11 + $0x78] sm:$0xff] %v1610_v35  ;;  %v871_v40 = vadd.f32 %v870_v38, %v2304_v9 }
 0x156   : > { %v761_v21 = vpop.f32.mrf.mxu0  ;;  %v872_v42 = vpop.f32.mrf.mxu1 }
 0x157   : > { %1212 = vst [vmem:[%s2295_s11 + $0x80] sm:$0xff] %v1611_v19  ;;  %v762_v24 = vadd.f32 %v761_v21, %v2288_v58  ;;  %v1612_v45 = vpack.c.bf16 %v871_v40, %v869_v36  ;;  %v873_v46 = vadd.f32 %v872_v42, %v2301_v6 }
 0x158   : > { %v765_v27 = vpop.f32.mrf.mxu0  ;;  %v874_v48 = vpop.f32.mrf.mxu1 }
 0x159   : > { %v1613_v29 = vpack.c.bf16 %v762_v24, %v760_v23  ;;  %v766_v33 = vadd.f32 %v765_v27, %v2285_v57  ;;  %1213 = vst [vmem:[%s2295_s11 + $0x88] sm:$0xff] %v1612_v45  ;;  %v875_v50 = vadd.f32 %v874_v48, %v2304_v9 }
 0x15a   : > { %v767_v31 = vpop.f32.mrf.mxu0  ;;  %v878_v52 = vpop.f32.mrf.mxu1 }
 0x15b   : > { %1214 = vst [vmem:[%s2295_s11 + $0x90] sm:$0xff] %v1613_v29  ;;  %v768_v34 = vadd.f32 %v767_v31, %v2288_v58  ;;  %v1614_v59 = vpack.c.bf16 %v875_v50, %v873_v46  ;;  %v879_v60 = vadd.f32 %v878_v52, %v2301_v6  ;;  %v1249_v46 = vpop.permute.xlu0 %1248 }
 0x15c   : > { %v769_v37 = vpop.f32.mrf.mxu0  ;;  %v880_v62 = vpop.f32.mrf.mxu1 }
 0x15d   : > { %v1615_v39 = vpack.c.bf16 %v768_v34, %v766_v33  ;;  %v770_v43 = vadd.f32 %v769_v37, %v2285_v57  ;;  %1215 = vst [vmem:[%s2295_s11 + $0x98] sm:$0xff] %v1614_v59  ;;  %v881_v0 = vadd.f32 %v880_v62, %v2304_v9 }
 0x15e   : > { %v771_v41 = vpop.f32.mrf.mxu0  ;;  %v882_v2 = vpop.f32.mrf.mxu1 }
 0x15f   : > { %1216 = vst [vmem:[%s2295_s11 + $0xa0] sm:$0xff] %v1615_v39  ;;  %v772_v44 = vadd.f32 %v771_v41, %v2288_v58  ;;  %v1616_v5 = vpack.c.bf16 %v881_v0, %v879_v60  ;;  %v883_v7 = vadd.f32 %v882_v2, %v2301_v6 }
 0x160   : > { %v775_v47 = vpop.f32.mrf.mxu0  ;;  %v884_v10 = vpop.f32.mrf.mxu1 }
 0x161   : > { %v1617_v49 = vpack.c.bf16 %v772_v44, %v770_v43  ;;  %v776_v54 = vadd.f32 %v775_v47, %v2285_v57  ;;  %1217 = vst [vmem:[%s2295_s11 + $0xa8] sm:$0xff] %v1616_v5  ;;  %v885_v13 = vadd.f32 %v884_v10, %v2304_v9 }
 0x162   : > { %v777_v51 = vpop.f32.mrf.mxu0  ;;  %v888_v15 = vpop.f32.mrf.mxu1 }
 0x163   : > { %1218 = vst [vmem:[%s2295_s11 + $0xb0] sm:$0xff] %v1617_v49  ;;  %v778_v55 = vadd.f32 %v777_v51, %v2288_v58  ;;  %v1618_v18 = vpack.c.bf16 %v885_v13, %v883_v7  ;;  %v889_v19 = vadd.f32 %v888_v15, %v2301_v6 }
 0x164   : > { %v779_v61 = vpop.f32.mrf.mxu0  ;;  %v890_v21 = vpop.f32.mrf.mxu1 }
 0x165   : > { %v1619_v63 = vpack.c.bf16 %v778_v55, %v776_v54  ;;  %v780_v3 = vadd.f32 %v779_v61, %v2285_v57  ;;  %1219 = vst [vmem:[%s2295_s11 + $0xb8] sm:$0xff] %v1618_v18  ;;  %v891_v23 = vadd.f32 %v890_v21, %v2304_v9 }
 0x166   : > { %v781_v1 = vpop.f32.mrf.mxu0  ;;  %v892_v25 = vpop.f32.mrf.mxu1 }
 0x167   : > { %1220 = vst [vmem:[%s2295_s11 + $0xc0] sm:$0xff] %v1619_v63  ;;  %v782_v4 = vadd.f32 %v781_v1, %v2288_v58  ;;  %v1620_v28 = vpack.c.bf16 %v891_v23, %v889_v19  ;;  %v893_v29 = vadd.f32 %v892_v25, %v2301_v6 }
 0x168   : > { %v785_v8 = vpop.f32.mrf.mxu0  ;;  %v894_v31 = vpop.f32.mrf.mxu1 }
 0x169   : > { %v1621_v11 = vpack.c.bf16 %v782_v4, %v780_v3  ;;  %v786_v16 = vadd.f32 %v785_v8, %v2285_v57  ;;  %1221 = vst [vmem:[%s2295_s11 + $0xc8] sm:$0xff] %v1620_v28  ;;  %v895_v33 = vadd.f32 %v894_v31, %v2304_v9 }
 0x16a   : > { %v787_v14 = vpop.f32.mrf.mxu0  ;;  %v898_v35 = vpop.f32.mrf.mxu1 }
 0x16b   : > { %1222 = vst [vmem:[%s2295_s11 + $0xd0] sm:$0xff] %v1621_v11  ;;  %v788_v17 = vadd.f32 %v787_v14, %v2288_v58  ;;  %v899_v36 = vadd.f32 %v898_v35, %v2301_v6 }
 0x16c   : > { %v789_v20 = vpop.f32.mrf.mxu0  ;;  %v900_v38 = vpop.f32.mrf.mxu1 }
 0x16d   : > { %v1623_v22 = vpack.c.bf16 %v788_v17, %v786_v16  ;;  %v790_v26 = vadd.f32 %v789_v20, %v2285_v57  ;;  %v901_v40 = vadd.f32 %v900_v38, %v2304_v9 }
 0x16e   : > { %v791_v24 = vpop.f32.mrf.mxu0  ;;  %v902_v42 = vpop.f32.mrf.mxu1 }
 0x16f   : > { %1224 = vst [vmem:[%s2295_s11 + $0xe0] sm:$0xff] %v1623_v22  ;;  %v792_v27 = vadd.f32 %v791_v24, %v2288_v58  ;;  %v1622_v58 = vpack.c.bf16 %v895_v33, %v893_v29  ;;  %v1624_v44 = vpack.c.bf16 %v901_v40, %v899_v36  ;;  %v903_v45 = vadd.f32 %v902_v42, %v2301_v6 }
 0x170   : > { %v1673_v30 = vpop.f32.mrf.mxu0  ;;  %v904_v48 = vpop.f32.mrf.mxu1 }
 0x171   : > { %v1625_v32 = vpack.c.bf16 %v792_v27, %v790_v26  ;;  %v950_v56 = vadd.f32 %v1673_v30, %v2384_v53  ;;  %1223 = vst [vmem:[%s2295_s11 + $0xd8] sm:$0xff] %v1622_v58  ;;  %1225 = vst [vmem:[%s2295_s11 + $0xe8] sm:$0xff] %v1624_v44  ;;  %v905_v50 = vadd.f32 %v904_v48, %v2304_v9 }
 0x172   : > { %v941_v34 = vpop.f32.mrf.mxu0  ;;  %v1285_v52 = vpop.f32.mrf.mxu1 }
 0x173   : > { %1226 = vst [vmem:[%s2295_s11 + $0xf0] sm:$0xff] %v1625_v32  ;;  %1230 = vst [vmem:[%s2396_s18 + $0x10] sm:$0xff] %v950_v56  ;;  %v942_v57 = vadd.f32 %v941_v34, %v2384_v53  ;;  %v1626_v54 = vpack.c.bf16 %v905_v50, %v903_v45  ;;  %v1286_v55 = vadd.f32 %v1285_v52, %v1249_v46 }
 0x174   : > { %v1674_v37 = vpop.f32.mrf.mxu0  ;;  %v1705_v9 = vpop.f32.mrf.mxu1 }
 0x175   : > { %1228 = vst [vmem:[%s2396_s18] sm:$0xff] %v942_v57  ;;  %v953_v39 = vadd.f32 %v1674_v37, %v2384_v53  ;;  %1227 = vst [vmem:[%s2295_s11 + $0xf8] sm:$0xff] %v1626_v54 }
 0x176   : > { %v944_v41 = vpop.f32.mrf.mxu0  ;;  %1291 = vst [vmem:[%s2427_s19] sm:$0xff] %v1286_v55  ;;  %v1288_v62 = vpop.f32.mrf.mxu1 }
 0x177   : > { %1231 = vst [vmem:[%s2396_s18 + $0x18] sm:$0xff] %v953_v39  ;;  %v945_v43 = vadd.f32 %v944_v41, %v2384_v53 }
 0x178   : > { %v1677_v47 = vpop.f32.mrf.mxu0 }
 0x179   : > { %1229 = vst [vmem:[%s2396_s18 + $0x8] sm:$0xff] %v945_v43  ;;  %v966_v49 = vadd.f32 %v1677_v47, %v2384_v53 }
 0x17a   : > { %v957_v51 = vpop.f32.mrf.mxu0 }
 0x17b   : > { %1234 = vst [vmem:[%s2396_s18 + $0x30] sm:$0xff] %v966_v49  ;;  %v958_v6 = vadd.f32 %v957_v51, %v2384_v53 }
 0x17c   : > { %v1678_v59 = vpop.f32.mrf.mxu0 }
 0x17d   : > { %1232 = vst [vmem:[%s2396_s18 + $0x20] sm:$0xff] %v958_v6  ;;  %v969_v60 = vadd.f32 %v1678_v59, %v2384_v53 }
 0x17e   : > { %v960_v61 = vpop.f32.mrf.mxu0 }
 0x17f   : > { %1917 = shalt.err (!%p1914_p0)
}
 0x180   : > { %s1918_s11 = scalar_lea.hbm %s2418_s9, 4096  ;;  %s1922_s12 = scalar_lea.hbm %s2559_s5, 12288 }
 0x181   : > { %p1919_p5 = scmp.ne.s32.totalorder %s2418_s9, %s1918_s11  ;;  %p1923_p4 = scmp.lt.s32.totalorder %s2418_s9, %s2559_s5 }
 0x182   : > { %p1924_p6 = scmp.lt.s32.totalorder %s1922_s12, %s1918_s11 }
 0x183   : > { %p1920_p9 = pnand %p1919_p5, %p2580_p10 }
 0x184   : > { %p1925_p8 = por %p1924_p6, %p1923_p4 }
 0x185   : > { %p1921_p1 = pneg %p1920_p9 }
 0x187   : > { %p1926_p3 = pnand %p1925_p8, %p1921_p1 }
 0x189   : > { %1929 = shalt.err (!%p1926_p3)
}
 0x18a   : > { %s2040_s15 = smov 256   ;;  %s2041_s23 = smov 16   ;;  %1235 = vst [vmem:[%s2396_s18 + $0x38] sm:$0xff] %v969_v60  ;;  %v961_v63 = vadd.f32 %v960_v61, %v2384_v53  ;;  %v1681_v0 = vpop.f32.mrf.mxu0  ;;  %v1706_v1 = vpop.f32.mrf.mxu1 }
 0x18b   : > { %1713 = dma.vmem_to_hbm [thread:$0]  (%p2580_p10), %s2420_s16, 4096, %s2418_s9, %s1293_s14, %s2040_s15, %s2040_s15, %s2041_s23   ;;  %v982_v2 = vadd.f32 %v1681_v0, %v2384_v53 }
 0x18c   : > { %1233 = vst [vmem:[%s2396_s18 + $0x28] sm:$0xff] %v961_v63  ;;  %v973_v3 = vpop.f32.mrf.mxu0  ;;  %s1297_s10 = sand.u32 1, %s2107_s28   ;;  %s1629_s16 = sshll.u32 %s2107_s28, 11 }
 0x18d   : > { %1238 = vst [vmem:[%s2396_s18 + $0x50] sm:$0xff] %v982_v2  ;;  %v974_v4 = vadd.f32 %v973_v3, %v2384_v53  ;;  %s1333_s9 = sshll.u32 %s2396_s18, 4  ;;  %s1349_s14 = sshll.u32 %s2427_s19, 4  ;;  %s2479_s9 = int_to_ptr.vmem [resolvable:$true] %s1333_s9  ;;  %s2488_s14 = int_to_ptr.vmem [resolvable:$true] %s1349_s14 }
 0x18e   : > { %v1682_v5 = vpop.f32.mrf.mxu0  ;;  %s1591_s29 = sshll.u32 %s2107_s28, 7  ;;  %s2477_s1 = scalar_lea.hbm %s2560_s6, %s1629_s16 }
 0x18f   : > { %1236 = vst [vmem:[%s2396_s18 + $0x40] sm:$0xff] %v974_v4  ;;  %v985_v7 = vadd.f32 %v1682_v5, %v2384_v53  ;;  %s2486_s30 = scalar_lea.hbm %s2561_s7, %s1591_s29  ;;  %s2491_s28 = scalar_lea.sflag [#allocation9], %s1297_s10 }
 0x190   : > { %v976_v8 = vpop.f32.mrf.mxu0  ;;  %s1930_s17 = scalar_lea.vmem %s2479_s9, 2048  ;;  %s2042_s15 = smov [#allocation8]  }
 0x191   : > { %1239 = vst [vmem:[%s2396_s18 + $0x58] sm:$0xff] %v985_v7  ;;  %v977_v10 = vadd.f32 %v976_v8, %v2384_v53  ;;  %p1931_p7 = scmp.ne.s32.totalorder %s2479_s9, %s1930_s17  ;;  %s1934_s23 = sshll.u32 %s2042_s15, 4  ;;  %s1935_s23 = int_to_ptr.vmem [resolvable:$false] %s1934_s23 }
 0x192   : > { %v1685_v11 = vpop.f32.mrf.mxu0  ;;  %s1936_s16 = scalar_lea.vmem %s1935_s23, 4096  ;;  %p1937_p2 = scmp.lt.s32.totalorder %s2479_s9, %s1935_s23 }
 0x193   : > { %1237 = vst [vmem:[%s2396_s18 + $0x48] sm:$0xff] %v977_v10  ;;  %v998_v12 = vadd.f32 %v1685_v11, %v2384_v53  ;;  %p1932_p11 = pnand %p1931_p7, %p2580_p10  ;;  %p1938_p13 = scmp.lt.s32.totalorder %s1936_s16, %s1930_s17 }
 0x194   : > { %v989_v13 = vpop.f32.mrf.mxu0 }
 0x195   : > { %1242 = vst [vmem:[%s2396_s18 + $0x70] sm:$0xff] %v998_v12  ;;  %v990_v14 = vadd.f32 %v989_v13, %v2384_v53  ;;  %p1933_p12 = pneg %p1932_p11  ;;  %p1939_p0 = por %p1938_p13, %p1937_p2 }
 0x196   : > { %v1686_v15 = vpop.f32.mrf.mxu0 }
 0x197   : > { %1240 = vst [vmem:[%s2396_s18 + $0x60] sm:$0xff] %v990_v14  ;;  %v1001_v16 = vadd.f32 %v1686_v15, %v2384_v53  ;;  %p1940_p5 = pnand %p1939_p0, %p1933_p12 }
 0x198   : > { %v992_v17 = vpop.f32.mrf.mxu0 }
 0x199   : > { %1243 = vst [vmem:[%s2396_s18 + $0x78] sm:$0xff] %v1001_v16  ;;  %v993_v18 = vadd.f32 %v992_v17, %v2384_v53 }
 0x19b   : > { %1241 = vst [vmem:[%s2396_s18 + $0x68] sm:$0xff] %v993_v18 }
 0x19c   : > { %1943 = shalt.err (!%p1940_p5)
}
 0x19d   : > { %s1944_s18 = scalar_lea.hbm %s2477_s1, 2048  ;;  %s1948_s11 = scalar_lea.hbm %s2560_s6, 6144 }
 0x19e   : > { %p1945_p9 = scmp.ne.s32.totalorder %s2477_s1, %s1944_s18  ;;  %p1949_p6 = scmp.lt.s32.totalorder %s2477_s1, %s2560_s6 }
 0x19f   : > { %p1950_p8 = scmp.lt.s32.totalorder %s1948_s11, %s1944_s18 }
 0x1a0   : > { %p1946_p1 = pnand %p1945_p9, %p2580_p10 }
 0x1a1   : > { %p1951_p3 = por %p1950_p8, %p1949_p6 }
 0x1a2   : > { %p1947_p4 = pneg %p1946_p1 }
 0x1a4   : > { %p1952_p7 = pnand %p1951_p3, %p1947_p4 }
 0x1a6   : > { %1955 = shalt.err (!%p1952_p7)
}
 0x1a7   : > { %s2043_s19 = smov 128   ;;  %s2044_s17 = smov 8  }
 0x1a8   : > { %1714 = dma.vmem_to_hbm [thread:$0]  (%p2580_p10), %s2479_s9, 2048, %s2477_s1, %s2491_s28, %s2043_s19, %s2043_s19, %s2044_s17  }
 0x1a9   : > { %s1956_s15 = scalar_lea.vmem %s2488_s14, 128  ;;  %s2045_s23 = smov [#allocation10]  }
 0x1aa   : > { %p1957_p11 = scmp.ne.s32.totalorder %s2488_s14, %s1956_s15  ;;  %s1960_s16 = sshll.u32 %s2045_s23, 4  ;;  %s1961_s16 = int_to_ptr.vmem [resolvable:$false] %s1960_s16 }
 0x1ab   : > { %s1962_s18 = scalar_lea.vmem %s1961_s16, 256  ;;  %p1963_p13 = scmp.lt.s32.totalorder %s2488_s14, %s1961_s16 }
 0x1ac   : > { %p1958_p12 = pnand %p1957_p11, %p2580_p10  ;;  %p1964_p0 = scmp.lt.s32.totalorder %s1962_s18, %s1956_s15 }
 0x1ae   : > { %p1959_p2 = pneg %p1958_p12  ;;  %p1965_p5 = por %p1964_p0, %p1963_p13 }
 0x1b0   : > { %p1966_p9 = pnand %p1965_p5, %p1959_p2 }
 0x1b2   : > { %1969 = shalt.err (!%p1966_p9)
}
 0x1b3   : > { %s1970_s10 = scalar_lea.hbm %s2486_s30, 128  ;;  %s1974_s29 = scalar_lea.hbm %s2561_s7, 384 }
 0x1b4   : > { %p1971_p1 = scmp.ne.s32.totalorder %s2486_s30, %s1970_s10  ;;  %p1975_p8 = scmp.lt.s32.totalorder %s2486_s30, %s2561_s7 }
 0x1b5   : > { %p1976_p3 = scmp.lt.s32.totalorder %s1974_s29, %s1970_s10 }
 0x1b6   : > { %p1972_p4 = pnand %p1971_p1, %p2580_p10 }
 0x1b7   : > { %p1977_p7 = por %p1976_p3, %p1975_p8 }
 0x1b8   : > { %p1973_p6 = pneg %p1972_p4 }
 0x1ba   : > { %p1978_p11 = pnand %p1977_p7, %p1973_p6 }
 0x1bc   : > { %1981 = shalt.err (!%p1978_p11)
}
 0x1bd   : > { %1715 = dma.vmem_to_hbm [thread:$0]  (%p2580_p10), %s2488_s14, 128, %s2486_s30, %s2491_s28  }
 0x1be PF: > { %p1740_p12 = scmp.ge.s32.totalorder %s2028_s27, 2  ;;  %s1361_s12 = sand.u32 1, %s2016_s24  }
 0x1bf   : > { %p2581_p2 = scmp.ne.s32.totalorder %s2569_s8, 0  ;;  %s1362_s19 = scalar_lea.sflag [#allocation4], %s1361_s12 }
 0x1c1   : > { %p1728_p13 = pnand %p1740_p12, %p2581_p2 }
 0x1c3   : > { %p1729_p0 = pneg %p1728_p13 }
 0x1c5   : > { %2007 = dma.done.wait (%p1729_p0), %s1362_s19, 4096  }
 0x1c6   : > { %2009 = vsyncadd (%p1729_p0), %s1362_s19, 4294963200  ;;  %s2582_s17 = sadd.s32 4294967294, %s2028_s27  }
 0x1c7   : > { %s1370_s15 = sand.u32 1, %s2582_s17  }
 0x1c8   : > { %s1371_s22 = scalar_lea.sflag [#allocation9], %s1370_s15 }
 0x1c9   : > { %2011 = dma.done.wait (%p1729_p0), %s1371_s22, 2176  }
 0x1ca   : > { %2013 = vsyncadd (%p1729_p0), %s1371_s22, 4294965120  ;;  %p25_p10 = scmp.ge.s32.totalorder %s2141_s13, 5   ;;  %s2583_s24 = smov %s2020_s25 }
 0x1cb   : > { %s2584_s25 = smov %s2024_s26  ;;  %s2585_s26 = smov %s2158_s21 }
 0x1cc   : > { %s2586_s27 = smov %s2141_s13  ;;  %27 = sbr.rel (!%p25_p10) target bundleno = 10 (0xa), region = 121 }
 0x1d1   :  { %1385 = vsyncpa [#allocation3], 1 }
 0x1d2   :  { %1387 = vsyncpa [#allocation3 + $0x1], 1 }
 0x1d3   :  { %1388 = vsyncpa [#allocation6], 1 }
 0x1d4   :  { %1389 = vsyncpa [#allocation4], 1 }
 0x1d5   :  { %1391 = vsyncpa [#allocation4 + $0x1], 1 }
 0x1d6   :  { %1392 = vsyncpa [#allocation9], 1 }
 0x1d7   :  { %1394 = vsyncpa [#allocation9 + $0x1], 1 }

</bundles_post_ra>
